<compile_context>
chip_gen: v5e
topology: v5e:2x2
jax: 0.10.0
libtpu: 0.0.40
codegen_flags: <defaults>
</compile_context>

<pallas_src>
import functools

import jax
import jax.numpy as jnp
import numpy as np
from jax import lax
from jax.experimental import pallas as pl
from jax.experimental.pallas import tpu as pltpu

NEG_INF = float("-inf")


def _aligner_kernel(*refs, method, num_layers, n_heads, do_softmax, apply_tril):
    """One (batch, target-tile) block.

    refs[0:L]   : (n_heads, tT, S)  per-layer decoder self-attentions (native dtype)
    refs[L]     : (1, S)       i32  pointer mask (nonzero => masked)
    refs[L + 1] : (tT, S)      f32  output tile of aligned attention logits
    """
    att_refs = refs[:num_layers]
    pmask_ref = refs[num_layers]
    out_ref = refs[num_layers + 1]
    tT, S = out_ref.shape

    # Single running accumulator over (layer, head): only one live (tT, S) tile.
    acc = None
    for l in range(num_layers):
        for h in range(n_heads):
            x = att_refs[l][h].astype(jnp.float32)            # (tT, S)
            if acc is None:
                acc = x
            elif method == "max":
                acc = jnp.maximum(acc, x)
            else:
                acc = acc + x
    if method == "mean":
        acc = acc * (1.0 / (num_layers * n_heads))

    if not do_softmax:
        acc = jnp.log(acc + 1e-9)                              # EUP, hidden under DMA

    # Fused tril(-1) + pointer mask -> a single select.
    keep = pmask_ref[...] == 0                                 # (1, S), broadcasts over rows
    if apply_tril:
        row0 = pl.program_id(1) * tT                           # global row offset of this tile
        row = lax.broadcasted_iota(jnp.int32, (tT, S), 0) + row0
        col = lax.broadcasted_iota(jnp.int32, (tT, S), 1)
        keep = jnp.logical_and(col < row, keep)                # (tT, S)

    out_ref[...] = jnp.where(keep, acc, NEG_INF)


def _pick_tile_t(T, S, L, n_heads, in_itemsize, budget_bytes=48 << 20):
    """Largest T-tile (divides T, respects dtype sublane multiple) whose
    double-buffered block footprint fits a v7x-safe VMEM budget."""
    sublane = max(8, 32 // in_itemsize)          # f32:8, bf16:16, int8/fp8:32

    def blk_bytes(tT):
        return 2 * (L * n_heads * tT * S * in_itemsize + tT * S * 4)

    cands = [d for d in range(min(T, 512), 0, -1)
             if T % d == 0 and (d % sublane == 0 or d == T)]
    for tT in cands:
        if blk_bytes(tT) <= budget_bytes:
            return tT
    return cands[-1] if cands else T


def inplace_attention_aligner(decoder_attentions, pointer_mask, *, bart_layers,
                              bart_heads, method="mean", do_softmax=False,
                              is_generating=False, tile_t=None):
    """decoder_attentions: list of [B, H, T, S] arrays (one per decoder layer,
    any float dtype).  pointer_mask: [B, 1, S] bool.  Returns [B, T, S] f32."""
    assert method in ("mean", "max")
    layers = bart_layers if isinstance(bart_layers, (list, tuple)) else [bart_layers]
    layer_atts = [decoder_attentions[l] for l in layers]       # no stack / no HBM copy
    L = len(layer_atts)
    B, H, T, S = layer_atts[0].shape
    n_heads = H if (bart_heads is None or bart_heads == "all") else int(bart_heads)
    assert 1 <= n_heads <= H, f"bart_heads={bart_heads} out of range for H={H}"

    in_dtype = layer_atts[0].dtype
    in_itemsize = jnp.dtype(in_dtype).itemsize
    sublane = max(8, 32 // in_itemsize)

    if tile_t is None:
        tile_t = _pick_tile_t(T, S, L, n_heads, in_itemsize)
    assert T % tile_t == 0 and (tile_t % sublane == 0 or tile_t == T), (
        f"tile_t={tile_t} must divide T={T} and be a multiple of {sublane} (or == T)")
    n_t = T // tile_t

    pmask = pointer_mask.astype(jnp.int32).reshape(B, 1, S)

    kernel = functools.partial(
        _aligner_kernel, method=method, num_layers=L, n_heads=n_heads,
        do_softmax=do_softmax, apply_tril=not is_generating)

    # Only DMA the first n_heads heads; tile the target axis; keep full-S lanes.
    att_spec = pl.BlockSpec((pl.Squeezed(), n_heads, tile_t, S),
                            lambda b, t: (b, 0, t, 0))
    pmask_spec = pl.BlockSpec((pl.Squeezed(), 1, S), lambda b, t: (b, 0, 0))
    out_spec = pl.BlockSpec((pl.Squeezed(), tile_t, S), lambda b, t: (b, t, 0))

    # Double-buffered inputs + output (+ tiny pmask) per grid step, plus headroom.
    block_bytes = 2 * (L * n_heads * tile_t * S * in_itemsize
                       + tile_t * S * 4 + S * 4)
    vmem_limit = max(block_bytes + (8 << 20), 32 << 20)        # <= ~56 MiB (v7x-safe)

    cost = pl.CostEstimate(
        flops=B * (L * n_heads + 2) * T * S,
        transcendentals=0 if do_softmax else B * T * S,
        bytes_accessed=B * (L * n_heads * T * S * in_itemsize + T * S * 4 + S * 4),
    )

    out = pl.pallas_call(
        kernel,
        out_shape=jax.ShapeDtypeStruct((B, T, S), jnp.float32),
        grid=(B, n_t),
        in_specs=[att_spec] * L + [pmask_spec],
        out_specs=out_spec,
        compiler_params=pltpu.CompilerParams(
            dimension_semantics=("parallel", "parallel"),
            vmem_limit_bytes=int(vmem_limit)),
        cost_estimate=cost,
    )(*layer_atts, pmask)
    return out


def _reference(decoder_attentions, pointer_mask, *, bart_layers, bart_heads,
               method, do_softmax, is_generating=False):
    """Pure-JAX re-implementation of the torch forward (for validation)."""
    layers = bart_layers if isinstance(bart_layers, (list, tuple)) else [bart_layers]
    atts = jnp.stack([decoder_attentions[l] for l in layers], axis=-1).astype(jnp.float32)
    red = (lambda x, a: jnp.mean(x, axis=a)) if method == "mean" else (lambda x, a: jnp.max(x, axis=a))
    att = red(atts, -1)                                                  # (B,H,T,S)
    nh = att.shape[1] if (bart_heads is None or bart_heads == "all") else int(bart_heads)
    aligned = red(att[:, :nh], 1)                                        # (B,T,S)
    if not do_softmax:
        aligned = jnp.log(aligned + 1e-9)
    if not is_generating:
        T, S = aligned.shape[1], aligned.shape[2]
        tril = jnp.tril(jnp.ones((T, S), dtype=bool), k=-1)
        aligned = jnp.where(tril[None], aligned, -jnp.inf)
    pm = jnp.broadcast_to(pointer_mask.reshape(aligned.shape[0], 1, -1).astype(bool),
                          aligned.shape)
    aligned = jnp.where(pm, -jnp.inf, aligned)
    return aligned


if __name__ == "__main__":
    # Deterministic synthetic inputs (the module has no learnable parameters).
    key = jax.random.PRNGKey(0)
    B, H, T, S = 2, 4, 32, 128
    n_decoder_layers = 3

    keys = jax.random.split(key, n_decoder_layers + 1)
    # Attention probabilities kept in bf16 in HBM (kernel upcasts internally).
    decoder_attentions = [
        jax.nn.softmax(jax.random.normal(keys[i], (B, H, T, S), jnp.float32),
                       axis=-1).astype(jnp.bfloat16)
        for i in range(n_decoder_layers)
    ]
    pointer_mask = jax.random.bernoulli(keys[-1], p=0.25, shape=(B, 1, S))

    configs = [
        # (bart_layers, bart_heads, method, do_softmax, is_generating, tile_t)
        ([0, 2], 3, "mean", False, False, 16),   # exercises T-tiling + global tril offset
        ([0, 1, 2], 2, "max", True, False, None),
        ([1], "all", "mean", False, True, None),  # generation path (no tril mask)
    ]

    for bl, bh, method, do_sm, gen, tt in configs:
        out = inplace_attention_aligner(
            decoder_attentions, pointer_mask,
            bart_layers=bl, bart_heads=bh, method=method,
            do_softmax=do_sm, is_generating=gen, tile_t=tt)
        out = jax.block_until_ready(out)
        ref = _reference(
            decoder_attentions, pointer_mask,
            bart_layers=bl, bart_heads=bh, method=method,
            do_softmax=do_sm, is_generating=gen)
        np.testing.assert_allclose(np.asarray(out), np.asarray(ref),
                                   rtol=1e-5, atol=1e-5)

    # TODO(synk): the `is_generating=True` branch also nulls
    # model_output['decoder_attentions'] (a Python-dict side effect) -- no kernel
    # equivalent; the masking math of that branch is covered above.
    print("KERNEL_OK")
</pallas_src>

<mosaic_0001>
module attributes {stable_mosaic.version = 11 : i64} {
  func.func @_aligner_kernel(%arg0: i32, %arg1: i32, %arg2: memref<1x3x16x128xbf16, #tpu.memory_space<vmem>>, %arg3: memref<1x3x16x128xbf16, #tpu.memory_space<vmem>>, %arg4: memref<1x1x128xi32, #tpu.memory_space<vmem>>, %arg5: memref<1x16x128xf32, #tpu.memory_space<vmem>>) attributes {dimension_semantics = [#tpu.dimension_semantics<parallel>, #tpu.dimension_semantics<parallel>], iteration_bounds = array<i64: 2, 2>, scalar_prefetch = 0 : i64, scratch_operands = 0 : i64, tpu.core_type = #tpu.core_type<tc>, window_params = [{transform_indices = @transform_0, window_bounds = array<i64: 1, 3, 16, 128>}, {transform_indices = @transform_1, window_bounds = array<i64: 1, 3, 16, 128>}, {transform_indices = @transform_2, window_bounds = array<i64: 1, 1, 128>}, {transform_indices = @transform_3, window_bounds = array<i64: 1, 16, 128>}]} {
    %c0 = arith.constant 0 : index
    %c0_0 = arith.constant 0 : index
    %c0_1 = arith.constant 0 : index
    %c0_2 = arith.constant 0 : index
    %0 = vector.load %arg2[%c0, %c0_0, %c0_1, %c0_2] : memref<1x3x16x128xbf16, #tpu.memory_space<vmem>>, vector<1x1x16x128xbf16>
    %1 = vector.shape_cast %0 : vector<1x1x16x128xbf16> to vector<16x128xbf16>
    %2 = arith.extf %1 : vector<16x128xbf16> to vector<16x128xf32>
    %c0_3 = arith.constant 0 : index
    %c1 = arith.constant 1 : index
    %c0_4 = arith.constant 0 : index
    %c0_5 = arith.constant 0 : index
    %3 = vector.load %arg2[%c0_3, %c1, %c0_4, %c0_5] : memref<1x3x16x128xbf16, #tpu.memory_space<vmem>>, vector<1x1x16x128xbf16>
    %4 = vector.shape_cast %3 : vector<1x1x16x128xbf16> to vector<16x128xbf16>
    %5 = arith.extf %4 : vector<16x128xbf16> to vector<16x128xf32>
    %6 = arith.addf %2, %5 : vector<16x128xf32>
    %c0_6 = arith.constant 0 : index
    %c2 = arith.constant 2 : index
    %c0_7 = arith.constant 0 : index
    %c0_8 = arith.constant 0 : index
    %7 = vector.load %arg2[%c0_6, %c2, %c0_7, %c0_8] : memref<1x3x16x128xbf16, #tpu.memory_space<vmem>>, vector<1x1x16x128xbf16>
    %8 = vector.shape_cast %7 : vector<1x1x16x128xbf16> to vector<16x128xbf16>
    %9 = arith.extf %8 : vector<16x128xbf16> to vector<16x128xf32>
    %10 = arith.addf %6, %9 : vector<16x128xf32>
    %c0_9 = arith.constant 0 : index
    %c0_10 = arith.constant 0 : index
    %c0_11 = arith.constant 0 : index
    %c0_12 = arith.constant 0 : index
    %11 = vector.load %arg3[%c0_9, %c0_10, %c0_11, %c0_12] : memref<1x3x16x128xbf16, #tpu.memory_space<vmem>>, vector<1x1x16x128xbf16>
    %12 = vector.shape_cast %11 : vector<1x1x16x128xbf16> to vector<16x128xbf16>
    %13 = arith.extf %12 : vector<16x128xbf16> to vector<16x128xf32>
    %14 = arith.addf %10, %13 : vector<16x128xf32>
    %c0_13 = arith.constant 0 : index
    %c1_14 = arith.constant 1 : index
    %c0_15 = arith.constant 0 : index
    %c0_16 = arith.constant 0 : index
    %15 = vector.load %arg3[%c0_13, %c1_14, %c0_15, %c0_16] : memref<1x3x16x128xbf16, #tpu.memory_space<vmem>>, vector<1x1x16x128xbf16>
    %16 = vector.shape_cast %15 : vector<1x1x16x128xbf16> to vector<16x128xbf16>
    %17 = arith.extf %16 : vector<16x128xbf16> to vector<16x128xf32>
    %18 = arith.addf %14, %17 : vector<16x128xf32>
    %c0_17 = arith.constant 0 : index
    %c2_18 = arith.constant 2 : index
    %c0_19 = arith.constant 0 : index
    %c0_20 = arith.constant 0 : index
    %19 = vector.load %arg3[%c0_17, %c2_18, %c0_19, %c0_20] : memref<1x3x16x128xbf16, #tpu.memory_space<vmem>>, vector<1x1x16x128xbf16>
    %20 = vector.shape_cast %19 : vector<1x1x16x128xbf16> to vector<16x128xbf16>
    %21 = arith.extf %20 : vector<16x128xbf16> to vector<16x128xf32>
    %22 = arith.addf %18, %21 : vector<16x128xf32>
    %cst = arith.constant 0.166666672 : f32
    %23 = vector.broadcast %cst : f32 to vector<16x128xf32>
    %24 = arith.mulf %22, %23 : vector<16x128xf32>
    %cst_21 = arith.constant 9.99999971E-10 : f32
    %25 = vector.broadcast %cst_21 : f32 to vector<16x128xf32>
    %26 = arith.addf %24, %25 : vector<16x128xf32>
    %27 = math.log %26 : vector<16x128xf32>
    %c0_22 = arith.constant 0 : index
    %c0_23 = arith.constant 0 : index
    %c0_24 = arith.constant 0 : index
    %28 = vector.load %arg4[%c0_22, %c0_23, %c0_24] : memref<1x1x128xi32, #tpu.memory_space<vmem>>, vector<1x1x128xi32>
    %29 = vector.shape_cast %28 : vector<1x1x128xi32> to vector<1x128xi32>
    %c0_i32 = arith.constant 0 : i32
    %30 = vector.broadcast %c0_i32 : i32 to vector<1x128xi32>
    %31 = arith.cmpi eq, %29, %30 : vector<1x128xi32>
    %c16_i32 = arith.constant 16 : i32
    %32 = arith.muli %arg1, %c16_i32 : i32
    %33 = tpu.iota {dimensions = array<i32: 0>} : vector<16x128xi32>
    %34 = vector.broadcast %32 : i32 to vector<16x128xi32>
    %35 = arith.addi %33, %34 : vector<16x128xi32>
    %36 = tpu.iota {dimensions = array<i32: 1>} : vector<16x128xi32>
    %37 = arith.cmpi slt, %36, %35 : vector<16x128xi32>
    %38 = vector.broadcast %31 : vector<1x128xi1> to vector<16x128xi1>
    %39 = arith.andi %37, %38 : vector<16x128xi1>
    %cst_25 = arith.constant 0xFF800000 : f32
    %40 = vector.broadcast %cst_25 : f32 to vector<16x128xf32>
    %41 = arith.select %39, %27, %40 : vector<16x128xi1>, vector<16x128xf32>
    %c0_26 = arith.constant 0 : index
    %c0_27 = arith.constant 0 : index
    %c0_28 = arith.constant 0 : index
    %42 = vector.load %arg5[%c0_26, %c0_27, %c0_28] : memref<1x16x128xf32, #tpu.memory_space<vmem>>, vector<1x16x128xf32>
    %43 = vector.shape_cast %42 : vector<1x16x128xf32> to vector<16x128xf32>
    %44 = vector.shape_cast %41 : vector<16x128xf32> to vector<1x16x128xf32>
    tpu.vector_store %arg5[%c0_26, %c0_27, %c0_28], %44 {strides = array<i32>} : memref<1x16x128xf32, #tpu.memory_space<vmem>>, vector<1x16x128xf32>,
    return
  }
  func.func @transform_0(%arg0: i32, %arg1: i32) -> (i32, i32, i32, i32) {
    %c0_i32 = arith.constant 0 : i32
    %c0_i32_0 = arith.constant 0 : i32
    %c0_i32_1 = arith.constant 0 : i32
    return %arg0, %c0_i32, %arg1, %c0_i32_0 : i32, i32, i32, i32
  }
  func.func @transform_1(%arg0: i32, %arg1: i32) -> (i32, i32, i32, i32) {
    %c0_i32 = arith.constant 0 : i32
    %c0_i32_0 = arith.constant 0 : i32
    %c0_i32_1 = arith.constant 0 : i32
    return %arg0, %c0_i32, %arg1, %c0_i32_0 : i32, i32, i32, i32
  }
  func.func @transform_2(%arg0: i32, %arg1: i32) -> (i32, i32, i32) {
    %c0_i32 = arith.constant 0 : i32
    %c0_i32_0 = arith.constant 0 : i32
    %c0_i32_1 = arith.constant 0 : i32
    return %arg0, %c0_i32, %c0_i32_0 : i32, i32, i32
  }
  func.func @transform_3(%arg0: i32, %arg1: i32) -> (i32, i32, i32) {
    %c0_i32 = arith.constant 0 : i32
    %c0_i32_0 = arith.constant 0 : i32
    return %arg0, %arg1, %c0_i32 : i32, i32, i32
  }
}

</mosaic_0001>

<bundles_post_ra>
// kernel: tpu_custom_call.1
= control target key start
LH: loop header
LB: loop body
LE: loop exit
PB: predicated region body
PF: predicated region fallthrough
CT: control target
= control target key end

     0   :  { %s1215_s0 = inlined_call_operand.hbm [shape: bf16[2,4,32,128], index: 0, kind: input, shape index: {}]   ;;  %s1216_s1 = inlined_call_operand.hbm [shape: bf16[2,4,32,128], index: 1, kind: input, shape index: {}]   ;;  %s1217_s2 = inlined_call_operand.hbm [shape: s32[2,1,128], index: 2, kind: input, shape index: {}]   ;;  %s1218_s3 = inlined_call_operand.hbm [shape: f32[2,32,128], index: 3, kind: output, shape index: {}]  }
   0x1   :  { %1226 = sst [smem:[#allocation27_spill]] %s1215_s0 }
   0x2   :  { %8 = vsyncpa [#allocation3], 0 }
   0x3   :  { %10 = vsyncpa [#allocation3 + $0x1], 0 }
   0x4   :  { %11 = vsyncpa [#allocation6], 0 }
   0x5   :  { %13 = vsyncpa [#allocation6 + $0x1], 0 }
   0x6   :  { %14 = vsyncpa [#allocation4], 0 }
   0x7   :  { %16 = vsyncpa [#allocation4 + $0x1], 0  ;;  %s949_s12 = smov 0   ;;  %s951_s13 = smov 0  }
   0x8   :  { %s953_s14 = smov 0   ;;  %s955_s15 = smov 0  }
   0x9   :  { %s957_s16 = smov 0   ;;  %s959_s17 = smov 0  }
   0xa   :  { %s961_s18 = smov 0   ;;  %s963_s19 = smov 0  }
   0xb   :  { %s965_s20 = smov 0   ;;  %s967_s21 = smov 0  }
   0xc   :  { %s969_s22 = smov 0  }
   0xd LB: > { %1227 = sst [smem:[#allocation19_spill]] %s884_s15  ;;  %s1005_s23 = sadd.s32 4294967295, %s912_s22   ;;  %s912_s22 = sphi %s969_s22, %s22_s22   ;;  %s908_s21 = sphi %s967_s21, %s1257_s21   ;;  %s904_s20 = sphi %s965_s20, %s1249_s20   ;;  %s900_s19 = sphi %s963_s19, %s1256_s19   ;;  %s896_s18 = sphi %s961_s18, %s1248_s18   ;;  %s892_s17 = sphi %s959_s17, %s1247_s17   ;;  %s888_s16 = sphi %s957_s16, %s1255_s16   ;;  %s884_s15 = sphi %s955_s15, %s1254_s15   ;;  %s880_s14 = sphi %s953_s14, %s1253_s14   ;;  %s876_s13 = sphi %s951_s13, %s1252_s13   ;;  %s872_s12 = sphi %s949_s12, %s1251_s12  }
   0xe   : > { %1228 = sst [smem:[#allocation20_spill]] %s892_s17  ;;  %s559_s24 = sadd.s32 4294967294, %s912_s22  }
   0xf   : > { %1229 = sst [smem:[#allocation21_spill]] %s904_s20  ;;  %s31_s25 = sadd.s32 1, %s904_s20 }
  0x10   : > { %s34_s26 = sadd.s32 1, %s908_s21  ;;  %p32_p0 = scmp.ge.s32.totalorder %s31_s25, 2 }
  0x11   : > { %s43_s27 = sadd.s32 1, %s892_s17  ;;  %p50_p1 = scmp.ne.s32.totalorder %s892_s17, %s888_s16 }
  0x12   : > { %p51_p2 = scmp.eq.s32.totalorder %s912_s22, 0  ;;  %s1259_s25 = smov (%p32_p0, %s31_s25), 0 }
  0x13   : > { %1230 = sst [smem:[#allocation22_spill]] %s1259_s25  ;;  %s1261_s26 = smov (!%p32_p0, %s34_s26), %s908_s21 }
  0x14   : > { %s39_s28 = ssub.s32 %s904_s20, %s1259_s25  ;;  %p1024_p3 = por %p51_p2, %p50_p1 }
  0x15   : > { %p36_p4 = scmp.ge.s32.totalorder %s1261_s26, 2  ;;  %p1219_p5 = scmp.ne.s32.totalorder %s888_s16, %s884_s15 }
  0x16   : > { %p57_p6 = scmp.eq.s32.totalorder %s1005_s23, 0  ;;  %s97_s30 = sadd.s32 1, %s880_s14 }
  0x17   : > { %s1263_s26 = smov (%p36_p4, %s1261_s26), 0  ;;  %p104_p8 = scmp.ne.s32.totalorder %s880_s14, %s876_s13 }
  0x18   : > { %1232 = sst [smem:[#allocation23_spill]] %s1263_s26  ;;  %p1039_p7 = por %p57_p6, %p1219_p5 }
  0x19   : > { %s38_s5 = ssub.s32 %s908_s21, %s1263_s26  ;;  %p110_p9 = scmp.ne.s32.totalorder %s876_s13, %s872_s12 }
  0x1a   : > { %s40_s6 = sor.u32 %s39_s28, %s38_s5  ;;  %p95_p10 = scmp.eq.s32.totalorder %s38_s5, 0 }
  0x1b   : > { %p41_p11 = scmp.eq.s32.totalorder %s40_s6, 0  ;;  %p1051_p12 = por %p104_p8, %p51_p2 }
  0x1c   : > { %s1056_s8 = scalar_select %p95_p10, %s880_s14, %s97_s30  }
  0x1d   : > { %s1059_s9 = scalar_select %p41_p11, %s892_s17, %s43_s27  }
  0x1e   : > { %1235 = sst [smem:[#allocation24_spill]] %s1056_s8  ;;  %p1063_p13 = por %p110_p9, %p57_p6 }
  0x1f   : > { %1236 = sst [smem:[#allocation25_spill]] %s1059_s9  ;;  %p136_p0 = scmp.eq.s32.totalorder %s1005_s23, 3 }
  0x20   : > { %p142_p4 = scmp.eq.s32.totalorder %s559_s24, 3  ;;  %p1239_p2 = scmp.ne.s32.totalorder %s888_s16, %s884_s15 }
  0x21   : > { %p1071_p5 = por %p136_p0, %p50_p1  ;;  %p561_p10 = scmp.ge.s32.totalorder %s912_s22, 4 }
  0x22   : > { %p1078_p8 = por %p142_p4, %p1239_p2 }
  0x23   : > { %158 = sbr.rel (%p561_p10) target bundleno = 72 (0x48), region = 16 }
  0x24   : > { %s1240_s12 = scalar_select %p1078_p8, 1, 0 }
  0x26   : > { %1241 = sst [smem:[#allocation26_spill]] %s1240_s12 }
  0x28   : > { %s162_s27 = sand.u32 1, %s892_s17   ;;  %s562_s24 = sshll.u32 %s904_s20, 1 }
  0x29   : > { %s1085_s28 = smul.u32 24, %s162_s27  ;;  %s563_s30 = sshll.u32 %s908_s21, 4 }
  0x2a   : > { %s1088_s5 = sadd.s32 %s563_s30, %s562_s24  ;;  %s1242_s0 = sld [smem:[#allocation27_spill]] }
  0x2b   : > { %s564_s6 = sshll.u32 %s1088_s5, 2  ;;  %s166_s26 = scalar_lea.vmem [#allocation2], %s1085_s28 }
  0x2c   : > { %s188_s25 = sshll.u32 %s166_s26, 4  ;;  %s914_s20 = smov 256   ;;  %s189_s25 = int_to_ptr.vmem [resolvable:$true] %s188_s25 }
  0x2d   : > { %s620_s17 = scalar_select %p1024_p3, [#allocation0], [#allocation13] }
  0x2e   : > { %621 = sst [smem:[#allocation10]] (%p1024_p3), %s914_s20  ;;  %s915_s30 = smov 128  }
  0x2f   : > { %s178_s15 = sld [smem:[%s620_s17]]   ;;  %s916_s5 = smov 2  }
  0x30   : > { %s173_s12 = scalar_lea.hbm %s1242_s0, %s564_s6  ;;  %622 = sst [smem:[#allocation10 + $0x1]] (%p1024_p3), %s915_s30 }
  0x31   : > { %s186_s24 = sshll.u32 %s173_s12, 4  ;;  %623 = sst [smem:[#allocation10 + $0x2]] (%p1024_p3), %s916_s5  ;;  %s187_s24 = int_to_ptr.hbm [resolvable:$true] %s186_s24 }
  0x32   : > { %s917_s26 = smov 64   ;;  %s918_s9 = smov 4  }
  0x33   : > { %624 = sst [smem:[#allocation10 + $0x3]] (%p1024_p3), %s917_s26  ;;  %s163_s17 = scalar_lea.sflag [#allocation3], %s162_s27 }
  0x34   : > { %625 = sst [smem:[#allocation10 + $0x4]] (%p1024_p3), %s917_s26  ;;  %s919_s0 = smov [#allocation9]  }
  0x35   : > { %s565_s8 = sshll.u32 %s178_s15, 26  ;;  %626 = sst [smem:[#allocation10 + $0x5]] (%p1024_p3), %s918_s9 }
  0x36   : > { %s566_s20 = sadd.s32 134217728, %s565_s8 }
  0x37   : > { %627 = dma.general (%p1024_p3), %s187_s24, 384, %s189_s25, %s163_s17, %s919_s0, [#allocation10], %s566_s20, 0  }
  0x38   : > { %s211_s12 = sand.u32 1, %s912_s22   ;;  %s222_s15 = scalar_lea.hbm %s1216_s1, %s564_s6 }
  0x39   : > { %s628_s26 = scalar_select %p1024_p3, [#allocation0], [#allocation14] }
  0x3a   : > { %s235_s8 = sshll.u32 %s222_s15, 4  ;;  %s215_s27 = scalar_lea.vmem [#allocation5], %s1085_s28  ;;  %s236_s8 = int_to_ptr.hbm [resolvable:$true] %s235_s8 }
  0x3b   : > { %s237_s9 = sshll.u32 %s215_s27, 4  ;;  %s227_s0 = sld [smem:[%s628_s26]]   ;;  %s238_s9 = int_to_ptr.vmem [resolvable:$true] %s237_s9 }
  0x3c   : > { %s920_s25 = smov 256   ;;  %s921_s24 = smov 128  }
  0x3d   : > { %629 = sst [smem:[#allocation12]] (%p1024_p3), %s920_s25  ;;  %s922_s20 = smov 2  }
  0x3e   : > { %630 = sst [smem:[#allocation12 + $0x1]] (%p1024_p3), %s921_s24  ;;  %s923_s6 = smov 64  }
  0x3f   : > { %631 = sst [smem:[#allocation12 + $0x2]] (%p1024_p3), %s922_s20  ;;  %s924_s30 = smov 4  }
  0x40   : > { %632 = sst [smem:[#allocation12 + $0x3]] (%p1024_p3), %s923_s6  ;;  %s212_s5 = scalar_lea.sflag [#allocation6], %s211_s12 }
  0x41   : > { %s570_s17 = sshll.u32 %s227_s0, 26  ;;  %633 = sst [smem:[#allocation12 + $0x4]] (%p1024_p3), %s923_s6 }
  0x42   : > { %s571_s28 = sadd.s32 134217728, %s570_s17  ;;  %634 = sst [smem:[#allocation12 + $0x5]] (%p1024_p3), %s924_s30 }
  0x43   : > { %s925_s15 = smov [#allocation11]   ;;  %s262_s26 = sand.u32 1, %s880_s14  }
  0x44   : > { %635 = dma.general (%p1024_p3), %s236_s8, 384, %s238_s9, %s212_s5, %s925_s15, [#allocation12], %s571_s28, 0  }
  0x45   : > { %s266_s24 = scalar_lea.hbm %s1217_s2, %s908_s21  ;;  %s263_s0 = scalar_lea.vmem [#allocation7], %s262_s26 }
  0x46   : > { %s268_s20 = sshll.u32 %s266_s24, 4  ;;  %s270_s6 = sshll.u32 %s263_s0, 4  ;;  %s269_s20 = int_to_ptr.hbm [resolvable:$true] %s268_s20  ;;  %s271_s6 = int_to_ptr.vmem [resolvable:$true] %s270_s6 }
  0x47   : > { %636 = dma.hbm_to_vmem [thread:$0]  (%p1051_p12), %s269_s20, 16, %s271_s6, %s212_s5  }
  0x48 PF: > { %p572_p1 = scmp.ge.s32.totalorder %s912_s22, 1  ;;  %p275_p3 = scmp.lt.s32.totalorder %s912_s22, 5 }
  0x4a   : > { %p276_p6 = pnand %p572_p1, %p275_p3 }
  0x4b   : > { %s1142_s29 = sand.u32 (!%p276_p6), 1, %s888_s16  }
  0x4c   : > { %279 = sbr.rel (%p276_p6) target bundleno = 120 (0x78), region = 32  ;;  %s282_s8 = scalar_lea.sflag (!%p276_p6), [#allocation3], %s1142_s29 }
  0x4d   : > { %s619_s12 = smul.u32 (!%p276_p6), 24, %s1142_s29 }
  0x4f   : > { %s285_s9 = scalar_lea.vmem (!%p276_p6), [#allocation2], %s619_s12 }
  0x51   : > { %855 = dma.done.wait (%p1039_p7), %s282_s8, 384  }
  0x52   : > { %857 = vsyncadd (%p1039_p7), %s282_s8, 4294966912  ;;  %s291_s7 = sand.u32 1, %s1005_s23   ;;  %s295_s28 = scalar_lea.vmem [#allocation5], %s619_s12 }
  0x53   : > { %s292_s17 = scalar_lea.sflag [#allocation6], %s291_s7 }
  0x54   : > { %859 = dma.done.wait (%p1039_p7), %s292_s17, 384  }
  0x55   : > { %861 = vsyncadd (%p1039_p7), %s292_s17, 4294966912  ;;  %s303_s30 = sand.u32 1, %s876_s13  }
  0x56   : > { %s304_s5 = scalar_lea.vmem [#allocation7], %s303_s30 }
  0x57   : > { %863 = dma.done.wait (%p1063_p13), %s292_s17, 16  }
  0x58   : > { %865 = vsyncadd (%p1063_p13), %s292_s17, 4294967280  ;;  %v590_v0 = vld [vmem:[%s285_s9] sm:$0xff]   ;;  %v613_v1 = vld [vmem:[%s285_s9 + $0x8] sm:$0xff]   ;;  %v389_v18 = vlaneseq  ;;  %s582_s23 = sshll.u32 %s896_s18, 4  ;;  %s584_s4 = sshll.u32 %s896_s18, 1  ;;  %v926_v33 = vmov 0  }
  0x59   : > { %v614_v2 = vld [vmem:[%s285_s9 + $0x10] sm:$0xff]   ;;  %v591_v3 = vunpack.c.l.bf16 %v590_v0  ;;  %v595_v4 = vunpack.c.l.bf16 %v613_v1  ;;  %v592_v7 = vunpack.c.h.bf16 %v590_v0  ;;  %v615_v8 = vld [vmem:[%s295_s28 + $0x8] sm:$0xff]   ;;  %v596_v9 = vunpack.c.h.bf16 %v613_v1  ;;  %v616_v13 = vld [vmem:[%s295_s28 + $0x10] sm:$0xff]   ;;  %s585_s10 = sshll.u32 %s900_s19, 2  ;;  %s573_s26 = sshll.u32 %s1142_s29, 4 }
  0x5a   : > { %v599_v5 = vunpack.c.l.bf16 %v614_v2  ;;  %v602_v6 = vld [vmem:[%s295_s28] sm:$0xff]   ;;  %v600_v12 = vunpack.c.h.bf16 %v614_v2  ;;  %v607_v17 = vunpack.c.l.bf16 %v615_v8  ;;  %v608_v20 = vunpack.c.h.bf16 %v615_v8  ;;  %v386_v23 = vld [vmem:[%s304_s5] sm:$0x1]  ;;  %s420_s15 = sadd.s32 %s585_s10, %s584_s4  ;;  %s336_s24 = scalar_lea.vmem [#allocation8], %s573_s26 }
  0x5b   : > { %v349_v10 = vadd.f32 %v595_v4, %v591_v3  ;;  %v603_v11 = vunpack.c.l.bf16 %v602_v6  ;;  %v350_v14 = vadd.f32 %v596_v9, %v592_v7  ;;  %v604_v15 = vunpack.c.h.bf16 %v602_v6  ;;  %s586_s27 = sshll.u32 %s420_s15, 3  ;;  %s423_s20 = sshll.u32 %s336_s24, 4  ;;  %s424_s20 = int_to_ptr.vmem [resolvable:$true] %s423_s20 }
  0x5c   : > { %v611_v22 = vunpack.c.l.bf16 %v616_v13  ;;  %v612_v25 = vunpack.c.h.bf16 %v616_v13  ;;  %v390_v27 = vshrl.u32 %v389_v18, 7  ;;  %vm387_vm0 = vcmp.eq.s32.totalorder %v386_v23, 0  ;;  %s422_s25 = scalar_lea.hbm %s1218_s3, %s586_s27  ;;  %s409_s6 = scalar_lea.sflag [#allocation4], %s1142_s29 }
  0x5d   : > { %v356_v16 = vadd.f32 %v599_v5, %v349_v10  ;;  %v357_v19 = vadd.f32 %v600_v12, %v350_v14  ;;  %v392_v32 = vstv %s582_s23  ;;  %v399_v34 = vsel %vm387_vm0, 1, %v926_v33  ;;  %s425_s0 = sshll.u32 %s422_s25, 4  ;;  %s802_s17 = scalar_lea.hbm %s1218_s3, 64  ;;  %s426_s0 = int_to_ptr.hbm [resolvable:$true] %s425_s0 }
  0x5e   : > { %v391_v35 = vadd.s32 8, %v390_v27  ;;  %v393_v38 = vadd.s32 %v392_v32, %v390_v27  ;;  %v396_v39 = vand.u32 127, %v389_v18  ;;  %v400_v40 = vperm.slane %v399_v34, 0  ;;  %s796_s12 = sshra.s32 %s426_s0, 4  ;;  %s797_s12 = int_to_ptr.hbm [resolvable:$true] %s796_s12 }
  0x5f   : > { %v362_v21 = vadd.f32 %v603_v11, %v356_v16  ;;  %v363_v24 = vadd.f32 %v604_v15, %v357_v19  ;;  %s798_s8 = scalar_lea.hbm %s797_s12, 16  ;;  %p803_p12 = scmp.lt.s32.totalorder %s797_s12, %s1218_s3 }
  0x60   : > { %v394_v42 = vadd.s32 %v392_v32, %v391_v35  ;;  %vm397_vm1 = vcmp.lt.s32.totalorder %v396_v39, %v393_v38  ;;  %vm401_vm2 = vcmp.eq.s32.totalorder %v400_v40, 1  ;;  %p799_p7 = scmp.ne.s32.totalorder %s797_s12, %s798_s8  ;;  %p804_p13 = scmp.lt.s32.totalorder %s802_s17, %s798_s8 }
  0x61   : > { %v369_v26 = vadd.f32 %v607_v17, %v362_v21  ;;  %v370_v28 = vadd.f32 %v608_v20, %v363_v24  ;;  %vm402_vm4 = vmand %vm397_vm1, %vm401_vm2 }
  0x62   : > { %vm398_vm3 = vcmp.lt.s32.totalorder %v396_v39, %v394_v42  ;;  %p800_p9 = pnand %p799_p7, %p1071_p5  ;;  %p805_p0 = por %p804_p13, %p803_p12 }
  0x63   : > { %v376_v29 = vadd.f32 %v611_v22, %v369_v26  ;;  %v377_v30 = vadd.f32 %v612_v25, %v370_v28  ;;  %vm403_vm5 = vmand %vm398_vm3, %vm401_vm2 }
  0x64   : > { %p801_p11 = pneg %p800_p9 }
  0x65   : > { %v378_v31 = vmul.f32 0.16666667, %v376_v29  ;;  %v379_v36 = vmul.f32 0.16666667, %v377_v30 }
  0x66   : > { %p806_p4 = pnand %p805_p0, %p801_p11 }
  0x67   : > { %v380_v37 = vadd.f32 1e-09, %v378_v31  ;;  %v381_v41 = vadd.f32 1e-09, %v379_v36 }
  0x69   : > { %750 = vlog2.f32 %v380_v37 }
  0x6a   : > { %752 = vlog2.f32 %v381_v41 }
  0x6f   : > { %v751_v43 = vpop.eup %750 }
  0x70   : > { %v753_v44 = vpop.eup %752  ;;  %v383_v45 = vmul.f32 0.6931472, %v751_v43 }
  0x71   : > { %v385_v46 = vmul.f32 0.6931472, %v753_v44 }
  0x72   : > { %v404_v47 = vsel %vm402_vm4, %v383_v45, -inf }
  0x73   : > { %406 = vst [vmem:[%s336_s24] sm:$0xff] %v404_v47  ;;  %v405_v48 = vsel %vm403_vm5, %v385_v46, -inf }
  0x74   : > { %407 = vst [vmem:[%s336_s24 + $0x8] sm:$0xff] %v405_v48 }
  0x75   : > { %809 = shalt.err (!%p806_p4)
}
  0x76   : > { %s927_s29 = smov 128   ;;  %s928_s5 = smov 8  }
  0x77   : > { %640 = dma.vmem_to_hbm [thread:$0]  (%p1071_p5), %s424_s20, 256, %s426_s0, %s409_s6, %s927_s29, %s927_s29, %s928_s5  }
  0x78 PF: > { %s1243_s23 = sld [smem:[#allocation19_spill]]  ;;  %p646_p2 = scmp.ge.s32.totalorder %s912_s22, 2 }
  0x7a   : > { %p643_p10 = pnand %p646_p2, %p1078_p8 }
  0x7c   : > { %p644_p1 = pneg %p643_p10 }
  0x7e   : > { %s440_s10 = sand.u32 1, %s1243_s23  }
  0x7f   : > { %s441_s15 = scalar_lea.sflag [#allocation4], %s440_s10 }
  0x80   : > { %867 = dma.done.wait (%p644_p1), %s441_s15, 256  }
  0x81   : > { %869 = vsyncadd (%p644_p1), %s441_s15, 4294967040  ;;  %s22_s22 = sadd.s32 1, %s912_s22   ;;  %s1245_s26 = sld [smem:[#allocation24_spill]] }
  0x82   : > { %p19_p3 = scmp.ge.s32.totalorder %s22_s22, 6   ;;  %s1246_s11 = sld [smem:[#allocation20_spill]] }
  0x83   : > { %s1247_s17 = sld [smem:[#allocation25_spill]]  ;;  %s1251_s12 = smov %s876_s13 }
  0x84   : > { %s1248_s18 = sld [smem:[#allocation21_spill]]  ;;  %s1252_s13 = smov %s880_s14 }
  0x85   : > { %s1249_s20 = sld [smem:[#allocation22_spill]]  ;;  %s1254_s15 = smov %s888_s16 }
  0x86   : > { %s1250_s27 = sld [smem:[#allocation23_spill]]  ;;  %s1256_s19 = smov %s908_s21 }
  0x87   : > { %s1253_s14 = smov %s1245_s26 }
  0x88   : > { %s1255_s16 = smov %s1246_s11  ;;  %21 = sbr.rel (!%p19_p3) target bundleno = 13 (0xd), region = 115 }
  0x8c   : > { %s1257_s21 = smov %s1250_s27 }
  0x8d   :  { %447 = vsyncpa [#allocation3], 1 }
  0x8e   :  { %449 = vsyncpa [#allocation3 + $0x1], 1 }
  0x8f   :  { %450 = vsyncpa [#allocation6], 1 }
  0x90   :  { %452 = vsyncpa [#allocation6 + $0x1], 1 }
  0x91   :  { %453 = vsyncpa [#allocation4], 1 }
  0x92   :  { %455 = vsyncpa [#allocation4 + $0x1], 1 }

</bundles_post_ra>
